<compile_context>
chip_gen: v5e
topology: v5e:2x2
jax: 0.10.0
libtpu: 0.0.40
codegen_flags: <defaults>
</compile_context>

<pallas_src>
import jax
import jax.numpy as jnp
from jax.experimental import pallas as pl
from jax.experimental.pallas import tpu as pltpu

FEAT_C = 384 + 384 + 128 + 128   # 1024, fixed by the module definition
HID_C = 512
OUT_C = 1
TILE_N_MAX = 512                 # flattened-voxel (lane) tile size


def _head_kernel(f_ref, w_ref, b_ref, o_ref):
    # f_ref: (1, FEAT_C, TILE_N)  feature tile, channels-first (native layout)
    # w_ref: (1, FEAT_C)          folded weight row  (W1 @ W2)^T
    # b_ref: (1, 1)               folded bias        (b1 @ W2 + b2)
    # o_ref: (1, OUT_C=1, TILE_N) lane-dense logits tile
    f = f_ref[0]                                                      # (FEAT_C, TILE_N)
    y = jnp.dot(w_ref[...], f, preferred_element_type=jnp.float32)    # (1, TILE_N)
    o_ref[0] = y + b_ref[...]


def prediction_head(feature, w1, b1, w2, b2):
    """feature: [B, FEAT_C, T, H, W] f32 -> class_output [B, 1, T, H, W] f32."""
    bsz, c, t, h, w = feature.shape
    assert c == FEAT_C
    n_sp = t * h * w

    # Fold the two purely-linear 1x1x1 conv layers (legal: no BN / activation
    # between them in the module definition). Tiny matmuls, plain JAX glue.
    w_fold = jnp.dot(w1, w2, preferred_element_type=jnp.float32).reshape(1, FEAT_C)
    b_fold = (jnp.dot(b1, w2, preferred_element_type=jnp.float32) + b2).reshape(1, 1)

    # Free reshape on the contiguous NCDHW feature: no HBM transpose copy.
    feat = feature.reshape(bsz, FEAT_C, n_sp)

    # Choose a large lane-aligned voxel tile; pad the voxel axis only if needed.
    tile_n = 0
    for cand in (TILE_N_MAX, 256, 128):
        if n_sp % cand == 0:
            tile_n = cand
            break
    if tile_n == 0:
        tile_n = min(TILE_N_MAX, pl.cdiv(n_sp, 128) * 128)
    n_pad = pl.cdiv(n_sp, tile_n) * tile_n
    if n_pad != n_sp:
        feat = jnp.pad(feat, ((0, 0), (0, 0), (0, n_pad - n_sp)))

    grid = (bsz, n_pad // tile_n)
    out = pl.pallas_call(
        _head_kernel,
        out_shape=jax.ShapeDtypeStruct((bsz, OUT_C, n_pad), jnp.float32),
        grid_spec=pltpu.PrefetchScalarGridSpec(
            num_scalar_prefetch=0,
            grid=grid,
            in_specs=[
                pl.BlockSpec((1, FEAT_C, tile_n), lambda b, i: (b, 0, i)),
                pl.BlockSpec((1, FEAT_C), lambda b, i: (0, 0)),
                pl.BlockSpec((1, 1), lambda b, i: (0, 0)),
            ],
            out_specs=pl.BlockSpec((1, OUT_C, tile_n), lambda b, i: (b, 0, i)),
        ),
        compiler_params=pltpu.CompilerParams(
            dimension_semantics=("parallel", "parallel"),
        ),
    )(feat, w_fold, b_fold)

    return out[:, :, :n_sp].reshape(bsz, OUT_C, t, h, w)


def extract_features_standin(x, proj_w):
    # TODO(synk): the real i3d_WSDDA backbone is an external nn.Module passed to
    # __init__; this deterministic stand-in (spatial avg-pool + pointwise channel
    # projection to 1024) only fixes the shapes/dtypes of `feature`.
    b, c, t, h, w = x.shape
    ph, pw = 4, 4                                   # pooled spatial size
    x_p = x.reshape(b, c, t, ph, h // ph, pw, w // pw).mean(axis=(4, 6))
    feat = jnp.einsum("bcthw,cf->bfthw", x_p, proj_w)
    return feat                                      # [B, FEAT_C, T, ph, pw] NCDHW


def i3d_wsdda_forward(x, params):
    """Mirrors I3D_WSDDA.forward: returns (feature, class_output)."""
    feature = extract_features_standin(x, params["proj_w"])   # [B,1024,T,h,w]

    # `features = feature.view(B*T, -1)` in the PyTorch forward is computed but
    # never used/returned, so it is omitted.

    # TODO(synk): nn.Dropout(0.5) is identity at inference; stochastic training
    # dropout (torch RNG semantics) is not reproduced here.
    new_feature = feature

    class_output = prediction_head(
        new_feature, params["w1"], params["b1"], params["w2"], params["b2"]
    )                                                          # [B,1,T,h,w]
    return feature, class_output


def init_params(key, in_channels):
    k_proj, k_w1, k_b1, k_w2, k_b2 = jax.random.split(key, 5)
    return {
        "proj_w": jax.random.normal(k_proj, (in_channels, FEAT_C), jnp.float32) * 0.05,
        "w1": jax.random.normal(k_w1, (FEAT_C, HID_C), jnp.float32) * 0.02,
        "b1": jax.random.normal(k_b1, (1, HID_C), jnp.float32) * 0.01,
        "w2": jax.random.normal(k_w2, (HID_C, OUT_C), jnp.float32) * 0.02,
        "b2": jax.random.normal(k_b2, (1, OUT_C), jnp.float32) * 0.01,
    }


if __name__ == "__main__":
    key = jax.random.PRNGKey(0)
    k_x, k_p = jax.random.split(key)

    # Small video-like input, NCDHW: batch=2, channels=4, timesteps=8, 16x16 spatial.
    x = jax.random.normal(k_x, (2, 4, 8, 16, 16), jnp.float32)
    params = init_params(k_p, in_channels=4)

    feature, class_output = jax.jit(i3d_wsdda_forward)(x, params)
    jax.block_until_ready((feature, class_output))

    # Reference check of the Pallas (folded) head against the plain two-layer JAX head.
    feat_flat = jnp.transpose(feature, (0, 2, 3, 4, 1)).reshape(-1, FEAT_C)
    ref = (feat_flat @ params["w1"] + params["b1"]) @ params["w2"] + params["b2"]
    ref = jnp.transpose(ref.reshape(2, 8, 4, 4, OUT_C), (0, 4, 1, 2, 3))
    assert feature.shape == (2, FEAT_C, 8, 4, 4)
    assert class_output.shape == (2, 1, 8, 4, 4)
    assert jnp.allclose(class_output, ref, atol=1e-5, rtol=1e-4)

    print("KERNEL_OK")
</pallas_src>

<mosaic_0001>
module attributes {stable_mosaic.version = 11 : i64} {
  func.func @_head_kernel(%arg0: i32, %arg1: i32, %arg2: memref<1x1024x128xf32, #tpu.memory_space<vmem>>, %arg3: memref<1x1024xf32, #tpu.memory_space<vmem>>, %arg4: memref<1x1xf32, #tpu.memory_space<vmem>>, %arg5: memref<1x1x128xf32, #tpu.memory_space<vmem>>) attributes {dimension_semantics = [#tpu.dimension_semantics<parallel>, #tpu.dimension_semantics<parallel>], iteration_bounds = array<i64: 2, 1>, scalar_prefetch = 0 : i64, scratch_operands = 0 : i64, tpu.core_type = #tpu.core_type<tc>, window_params = [{transform_indices = @transform_0, window_bounds = array<i64: 1, 1024, 128>}, {pipeline_mode = #tpu.pipeline_mode<synchronous>, transform_indices = @transform_1, window_bounds = array<i64: 1, 1024>}, {pipeline_mode = #tpu.pipeline_mode<synchronous>, transform_indices = @transform_2, window_bounds = array<i64: 1, 1>}, {transform_indices = @transform_3, window_bounds = array<i64: 1, 1, 128>}]} {
    %c0 = arith.constant 0 : index
    %c0_0 = arith.constant 0 : index
    %c0_1 = arith.constant 0 : index
    %0 = vector.load %arg2[%c0, %c0_0, %c0_1] : memref<1x1024x128xf32, #tpu.memory_space<vmem>>, vector<1x1024x128xf32>
    %1 = vector.shape_cast %0 : vector<1x1024x128xf32> to vector<1024x128xf32>
    %c0_2 = arith.constant 0 : index
    %c0_3 = arith.constant 0 : index
    %2 = vector.load %arg3[%c0_2, %c0_3] : memref<1x1024xf32, #tpu.memory_space<vmem>>, vector<1x1024xf32>
    %cst = arith.constant dense<0.000000e+00> : vector<1x128xf32>
    %3 = tpu.matmul %2, %1, %cst {dimension_numbers = #tpu.dot_dimension_numbers<[1], [0], [0], [1], [0, 0, 1, 1], [], []>} : vector<1x1024xf32>, vector<1024x128xf32>, vector<1x128xf32> -> vector<1x128xf32>
    %c0_4 = arith.constant 0 : index
    %c0_5 = arith.constant 0 : index
    %4 = vector.load %arg4[%c0_4, %c0_5] : memref<1x1xf32, #tpu.memory_space<vmem>>, vector<1x1xf32>
    %5 = vector.broadcast %4 : vector<1x1xf32> to vector<1x128xf32>
    %6 = arith.addf %3, %5 : vector<1x128xf32>
    %c0_6 = arith.constant 0 : index
    %c0_7 = arith.constant 0 : index
    %c0_8 = arith.constant 0 : index
    %7 = vector.load %arg5[%c0_6, %c0_7, %c0_8] : memref<1x1x128xf32, #tpu.memory_space<vmem>>, vector<1x1x128xf32>
    %8 = vector.shape_cast %7 : vector<1x1x128xf32> to vector<1x128xf32>
    %9 = vector.shape_cast %6 : vector<1x128xf32> to vector<1x1x128xf32>
    tpu.vector_store %arg5[%c0_6, %c0_7, %c0_8], %9 {strides = array<i32>} : memref<1x1x128xf32, #tpu.memory_space<vmem>>, vector<1x1x128xf32>,
    return
  }
  func.func @transform_0(%arg0: i32, %arg1: i32) -> (i32, i32, i32) {
    %c0_i32 = arith.constant 0 : i32
    %c0_i32_0 = arith.constant 0 : i32
    return %arg0, %c0_i32, %arg1 : i32, i32, i32
  }
  func.func @transform_1(%arg0: i32, %arg1: i32) -> (i32, i32) {
    %c0_i32 = arith.constant 0 : i32
    %c0_i32_0 = arith.constant 0 : i32
    %c0_i32_1 = arith.constant 0 : i32
    return %c0_i32, %c0_i32_0 : i32, i32
  }
  func.func @transform_2(%arg0: i32, %arg1: i32) -> (i32, i32) {
    %c0_i32 = arith.constant 0 : i32
    %c0_i32_0 = arith.constant 0 : i32
    %c0_i32_1 = arith.constant 0 : i32
    return %c0_i32, %c0_i32_0 : i32, i32
  }
  func.func @transform_3(%arg0: i32, %arg1: i32) -> (i32, i32, i32) {
    %c0_i32 = arith.constant 0 : i32
    %c0_i32_0 = arith.constant 0 : i32
    return %arg0, %c0_i32, %arg1 : i32, i32, i32
  }
}

</mosaic_0001>

<bundles_post_ra>
// kernel: i3d_wsdda_forward.1
= control target key start
LH: loop header
LB: loop body
LE: loop exit
PB: predicated region body
PF: predicated region fallthrough
CT: control target
= control target key end

     0   :  { %s669_s14 = smov 0   ;;  %s671_s15 = smov 0   ;;  %s849_s0 = inlined_call_operand.vmem [shape: f32[2,1024,128], index: 0, kind: input, shape index: {}]   ;;  %s850_s1 = inlined_call_operand.vmem [shape: f32[1,1024], index: 1, kind: input, shape index: {}]   ;;  %s851_s2 = inlined_call_operand.<no memory space> [shape: f32[1,1], index: 2, kind: input, shape index: {}]   ;;  %s852_s3 = inlined_call_operand.vmem [shape: f32[2,1,128], index: 3, kind: output, shape index: {}]  }
   0x1   :  { %v8_v0 = vstv %s851_s2  ;;  %s673_s16 = smov 0  }
   0x2   :  { %9 = vst [vmem:[#allocation2] sm:$0x1] %v8_v0 }
   0x3 LB: > { %s27_s2 = sadd.s32 1, %s639_s15  ;;  %p589_p0 = scmp.ge.s32.totalorder %s643_s16, 1  ;;  %s643_s16 = sphi %s673_s16, %s15_s16   ;;  %s639_s15 = sphi %s671_s15, %s854_s15   ;;  %s635_s14 = sphi %s669_s14, %s853_s14  }
   0x4   : > { %p29_p1 = scmp.ge.s32.totalorder %s27_s2, 2  ;;  %p158_p2 = scmp.lt.s32.totalorder %s643_s16, 3 }
   0x6   : > { %s856_s2 = smov (%p29_p1, %s27_s2), 0  ;;  %p159_p3 = pnand %p589_p0, %p158_p2 }
   0x7   : > { %p186_p4 = scmp.lt.s32.totalorder (!%p159_p3), %s635_s14, 1 }
   0x8   : > { %162 = sbr.rel (%p159_p3) target bundleno = 220 (0xdc), region = 32 }
   0xd   : > { %s858_s14 = smov (!%p186_p4, %s635_s14), 1 }
   0xe   : > { %s594_s17 = sshll.u32 %s858_s14, 10  ;;  %s199_s25 = scalar_lea.vmem %s852_s3, %s858_s14 }
   0xf   : > { %s693_s20 = scalar_lea.vmem %s849_s0, %s594_s17 }
  0x10   : > { %v247_v1 = vld [vmem:[%s693_s20 + $0x178] sm:$0xff]  ;;  %v246_v3 = vld [vmem:[%s693_s20 + $0x170] sm:$0xff]  ;;  %v245_v7 = vld [vmem:[%s693_s20 + $0x168] sm:$0xff] }
  0x11   : > { %v215_v2 = vld [vmem:[%s693_s20 + $0x78] sm:$0xff]  ;;  %393 = vmatpush.msra.mxu2 %v247_v1  ;;  %v214_v5 = vld [vmem:[%s693_s20 + $0x70] sm:$0xff]  ;;  %v213_v9 = vld [vmem:[%s693_s20 + $0x68] sm:$0xff] }
  0x12   : > { %353 = vmatpush.msra.mxu0 %v215_v2  ;;  %v263_v4 = vld [vmem:[%s693_s20 + $0x1f8] sm:$0xff]  ;;  %v262_v8 = vld [vmem:[%s693_s20 + $0x1f0] sm:$0xff]  ;;  %v261_v11 = vld [vmem:[%s693_s20 + $0x1e8] sm:$0xff] }
  0x13   : > { %v231_v6 = vld [vmem:[%s693_s20 + $0xf8] sm:$0xff]  ;;  %413 = vmatpush.msra.mxu3 %v263_v4  ;;  %394 = vmatpush.msra.mxu2 %v246_v3  ;;  %v230_v10 = vld [vmem:[%s693_s20 + $0xf0] sm:$0xff]  ;;  %v244_v12 = vld [vmem:[%s693_s20 + $0x160] sm:$0xff] }
  0x14   : > { %373 = vmatpush.msra.mxu1 %v231_v6  ;;  %354 = vmatpush.msra.mxu0 %v214_v5  ;;  %v212_v13 = vld [vmem:[%s693_s20 + $0x60] sm:$0xff]  ;;  %v229_v14 = vld [vmem:[%s693_s20 + $0xe8] sm:$0xff]  ;;  %v243_v17 = vld [vmem:[%s693_s20 + $0x158] sm:$0xff] }
  0x15   : > { %414 = vmatpush.msra.mxu3 %v262_v8  ;;  %395 = vmatpush.msra.mxu2 %v245_v7  ;;  %v260_v15 = vld [vmem:[%s693_s20 + $0x1e0] sm:$0xff]  ;;  %v211_v18 = vld [vmem:[%s693_s20 + $0x58] sm:$0xff]  ;;  %v242_v21 = vld [vmem:[%s693_s20 + $0x150] sm:$0xff] }
  0x16   : > { %374 = vmatpush.msra.mxu1 %v230_v10  ;;  %355 = vmatpush.msra.mxu0 %v213_v9  ;;  %v228_v16 = vld [vmem:[%s693_s20 + $0xe0] sm:$0xff]  ;;  %v259_v19 = vld [vmem:[%s693_s20 + $0x1d8] sm:$0xff]  ;;  %v210_v22 = vld [vmem:[%s693_s20 + $0x50] sm:$0xff] }
  0x17   : > { %415 = vmatpush.msra.mxu3 %v261_v11  ;;  %396 = vmatpush.msra.mxu2 %v244_v12  ;;  %v227_v20 = vld [vmem:[%s693_s20 + $0xd8] sm:$0xff]  ;;  %v258_v23 = vld [vmem:[%s693_s20 + $0x1d0] sm:$0xff]  ;;  %v241_v25 = vld [vmem:[%s693_s20 + $0x148] sm:$0xff] }
  0x18   : > { %375 = vmatpush.msra.mxu1 %v229_v14  ;;  %356 = vmatpush.msra.mxu0 %v212_v13  ;;  %v226_v24 = vld [vmem:[%s693_s20 + $0xd0] sm:$0xff]  ;;  %v209_v26 = vld [vmem:[%s693_s20 + $0x48] sm:$0xff]  ;;  %v240_v29 = vld [vmem:[%s693_s20 + $0x140] sm:$0xff] }
  0x19   : > { %416 = vmatpush.msra.mxu3 %v260_v15  ;;  %397 = vmatpush.msra.mxu2 %v243_v17  ;;  %v257_v27 = vld [vmem:[%s693_s20 + $0x1c8] sm:$0xff]  ;;  %v208_v30 = vld [vmem:[%s693_s20 + $0x40] sm:$0xff]  ;;  %v239_v33 = vld [vmem:[%s693_s20 + $0x138] sm:$0xff] }
  0x1a   : > { %376 = vmatpush.msra.mxu1 %v228_v16  ;;  %357 = vmatpush.msra.mxu0 %v211_v18  ;;  %v225_v28 = vld [vmem:[%s693_s20 + $0xc8] sm:$0xff]  ;;  %v256_v31 = vld [vmem:[%s693_s20 + $0x1c0] sm:$0xff]  ;;  %v207_v34 = vld [vmem:[%s693_s20 + $0x38] sm:$0xff] }
  0x1b   : > { %417 = vmatpush.msra.mxu3 %v259_v19  ;;  %398 = vmatpush.msra.mxu2 %v242_v21  ;;  %v224_v32 = vld [vmem:[%s693_s20 + $0xc0] sm:$0xff]  ;;  %v255_v35 = vld [vmem:[%s693_s20 + $0x1b8] sm:$0xff]  ;;  %v238_v37 = vld [vmem:[%s693_s20 + $0x130] sm:$0xff] }
  0x1c   : > { %377 = vmatpush.msra.mxu1 %v227_v20  ;;  %358 = vmatpush.msra.mxu0 %v210_v22  ;;  %v223_v36 = vld [vmem:[%s693_s20 + $0xb8] sm:$0xff]  ;;  %v206_v38 = vld [vmem:[%s693_s20 + $0x30] sm:$0xff]  ;;  %v237_v41 = vld [vmem:[%s693_s20 + $0x128] sm:$0xff] }
  0x1d   : > { %418 = vmatpush.msra.mxu3 %v258_v23  ;;  %399 = vmatpush.msra.mxu2 %v241_v25  ;;  %v254_v39 = vld [vmem:[%s693_s20 + $0x1b0] sm:$0xff]  ;;  %v205_v42 = vld [vmem:[%s693_s20 + $0x28] sm:$0xff]  ;;  %v236_v45 = vld [vmem:[%s693_s20 + $0x120] sm:$0xff] }
  0x1e   : > { %378 = vmatpush.msra.mxu1 %v226_v24  ;;  %359 = vmatpush.msra.mxu0 %v209_v26  ;;  %v222_v40 = vld [vmem:[%s693_s20 + $0xb0] sm:$0xff]  ;;  %v253_v43 = vld [vmem:[%s693_s20 + $0x1a8] sm:$0xff]  ;;  %v204_v46 = vld [vmem:[%s693_s20 + $0x20] sm:$0xff] }
  0x1f   : > { %419 = vmatpush.msra.mxu3 %v257_v27  ;;  %400 = vmatpush.msra.mxu2 %v240_v29  ;;  %v221_v44 = vld [vmem:[%s693_s20 + $0xa8] sm:$0xff]  ;;  %v252_v47 = vld [vmem:[%s693_s20 + $0x1a0] sm:$0xff]  ;;  %v235_v49 = vld [vmem:[%s693_s20 + $0x118] sm:$0xff] }
  0x20   : > { %379 = vmatpush.msra.mxu1 %v225_v28  ;;  %360 = vmatpush.msra.mxu0 %v208_v30  ;;  %v220_v48 = vld [vmem:[%s693_s20 + $0xa0] sm:$0xff]  ;;  %v203_v50 = vld [vmem:[%s693_s20 + $0x18] sm:$0xff]  ;;  %v234_v53 = vld [vmem:[%s693_s20 + $0x110] sm:$0xff] }
  0x21   : > { %420 = vmatpush.msra.mxu3 %v256_v31  ;;  %401 = vmatpush.msra.mxu2 %v239_v33  ;;  %v251_v51 = vld [vmem:[%s693_s20 + $0x198] sm:$0xff]  ;;  %v202_v54 = vld [vmem:[%s693_s20 + $0x10] sm:$0xff]  ;;  %v233_v57 = vld [vmem:[%s693_s20 + $0x108] sm:$0xff] }
  0x22   : > { %380 = vmatpush.msra.mxu1 %v224_v32  ;;  %361 = vmatpush.msra.mxu0 %v207_v34  ;;  %v219_v52 = vld [vmem:[%s693_s20 + $0x98] sm:$0xff]  ;;  %v250_v55 = vld [vmem:[%s693_s20 + $0x190] sm:$0xff]  ;;  %v201_v58 = vld [vmem:[%s693_s20 + $0x8] sm:$0xff] }
  0x23   : > { %421 = vmatpush.msra.mxu3 %v255_v35  ;;  %402 = vmatpush.msra.mxu2 %v238_v37  ;;  %v218_v56 = vld [vmem:[%s693_s20 + $0x90] sm:$0xff]  ;;  %v249_v59 = vld [vmem:[%s693_s20 + $0x188] sm:$0xff]  ;;  %v232_v61 = vld [vmem:[%s693_s20 + $0x100] sm:$0xff] }
  0x24   : > { %381 = vmatpush.msra.mxu1 %v223_v36  ;;  %362 = vmatpush.msra.mxu0 %v206_v38  ;;  %v217_v60 = vld [vmem:[%s693_s20 + $0x88] sm:$0xff]  ;;  %v200_v62 = vld [vmem:[%s693_s20] sm:$0xff]  ;;  %v311_v63 = vld [vmem:[%s693_s20 + $0x378] sm:$0xff] }
  0x25   : > { %422 = vmatpush.msra.mxu3 %v254_v39  ;;  %403 = vmatpush.msra.mxu2 %v237_v41  ;;  %v248_v0 = vld [vmem:[%s693_s20 + $0x180] sm:$0xff]  ;;  %v279_v1 = vld [vmem:[%s693_s20 + $0x278] sm:$0xff]  ;;  %v310_v3 = vld [vmem:[%s693_s20 + $0x370] sm:$0xff] }
  0x26   : > { %382 = vmatpush.msra.mxu1 %v222_v40  ;;  %363 = vmatpush.msra.mxu0 %v205_v42  ;;  %v327_v2 = vld [vmem:[%s693_s20 + $0x3f8] sm:$0xff]  ;;  %v216_v4 = vld [vmem:[%s693_s20 + $0x80] sm:$0xff]  ;;  %v278_v5 = vld [vmem:[%s693_s20 + $0x270] sm:$0xff] }
  0x27   : > { %423 = vmatpush.msra.mxu3 %v253_v43  ;;  %404 = vmatpush.msra.mxu2 %v236_v45  ;;  %v295_v6 = vld [vmem:[%s693_s20 + $0x2f8] sm:$0xff]  ;;  %v309_v7 = vld [vmem:[%s693_s20 + $0x368] sm:$0xff]  ;;  %v326_v8 = vld [vmem:[%s693_s20 + $0x3f0] sm:$0xff] }
  0x28   : > { %383 = vmatpush.msra.mxu1 %v221_v44  ;;  %364 = vmatpush.msra.mxu0 %v204_v46  ;;  %v277_v9 = vld [vmem:[%s693_s20 + $0x268] sm:$0xff]  ;;  %v294_v10 = vld [vmem:[%s693_s20 + $0x2f0] sm:$0xff]  ;;  %v308_v11 = vld [vmem:[%s693_s20 + $0x360] sm:$0xff] }
  0x29   : > { %424 = vmatpush.msra.mxu3 %v252_v47  ;;  %405 = vmatpush.msra.mxu2 %v235_v49  ;;  %v325_v12 = vld [vmem:[%s693_s20 + $0x3e8] sm:$0xff]  ;;  %v276_v13 = vld [vmem:[%s693_s20 + $0x260] sm:$0xff]  ;;  %v307_v15 = vld [vmem:[%s693_s20 + $0x358] sm:$0xff] }
  0x2a   : > { %384 = vmatpush.msra.mxu1 %v220_v48  ;;  %365 = vmatpush.msra.mxu0 %v203_v50  ;;  %v293_v14 = vld [vmem:[%s693_s20 + $0x2e8] sm:$0xff]  ;;  %v324_v16 = vld [vmem:[%s693_s20 + $0x3e0] sm:$0xff]  ;;  %v275_v17 = vld [vmem:[%s693_s20 + $0x258] sm:$0xff] }
  0x2b   : > { %425 = vmatpush.msra.mxu3 %v251_v51  ;;  %406 = vmatpush.msra.mxu2 %v234_v53  ;;  %v292_v18 = vld [vmem:[%s693_s20 + $0x2e0] sm:$0xff]  ;;  %v306_v19 = vld [vmem:[%s693_s20 + $0x350] sm:$0xff]  ;;  %v323_v20 = vld [vmem:[%s693_s20 + $0x3d8] sm:$0xff] }
  0x2c   : > { %385 = vmatpush.msra.mxu1 %v219_v52  ;;  %366 = vmatpush.msra.mxu0 %v202_v54  ;;  %v274_v21 = vld [vmem:[%s693_s20 + $0x250] sm:$0xff]  ;;  %v291_v22 = vld [vmem:[%s693_s20 + $0x2d8] sm:$0xff]  ;;  %v305_v23 = vld [vmem:[%s693_s20 + $0x348] sm:$0xff] }
  0x2d   : > { %426 = vmatpush.msra.mxu3 %v250_v55  ;;  %407 = vmatpush.msra.mxu2 %v233_v57  ;;  %v322_v24 = vld [vmem:[%s693_s20 + $0x3d0] sm:$0xff]  ;;  %v273_v25 = vld [vmem:[%s693_s20 + $0x248] sm:$0xff]  ;;  %v304_v27 = vld [vmem:[%s693_s20 + $0x340] sm:$0xff] }
  0x2e   : > { %386 = vmatpush.msra.mxu1 %v218_v56  ;;  %367 = vmatpush.msra.mxu0 %v201_v58  ;;  %v290_v26 = vld [vmem:[%s693_s20 + $0x2d0] sm:$0xff]  ;;  %v321_v28 = vld [vmem:[%s693_s20 + $0x3c8] sm:$0xff]  ;;  %v272_v29 = vld [vmem:[%s693_s20 + $0x240] sm:$0xff] }
  0x2f   : > { %427 = vmatpush.msra.mxu3 %v249_v59  ;;  %408 = vmatpush.msra.mxu2 %v232_v61  ;;  %v289_v30 = vld [vmem:[%s693_s20 + $0x2c8] sm:$0xff]  ;;  %v303_v31 = vld [vmem:[%s693_s20 + $0x338] sm:$0xff]  ;;  %v320_v32 = vld [vmem:[%s693_s20 + $0x3c0] sm:$0xff] }
  0x30   : > { %387 = vmatpush.msra.mxu1 %v217_v60  ;;  %368 = vmatpush.msra.mxu0 %v200_v62  ;;  %v271_v33 = vld [vmem:[%s693_s20 + $0x238] sm:$0xff]  ;;  %v288_v34 = vld [vmem:[%s693_s20 + $0x2c0] sm:$0xff]  ;;  %v302_v35 = vld [vmem:[%s693_s20 + $0x330] sm:$0xff] }
  0x31   : > { %473 = vmatpush.msrb.mxu2 %v311_v63  ;;  %428 = vmatpush.msra.mxu3 %v248_v0  ;;  %v319_v36 = vld [vmem:[%s693_s20 + $0x3b8] sm:$0xff]  ;;  %v270_v37 = vld [vmem:[%s693_s20 + $0x230] sm:$0xff]  ;;  %v800_v39 = vld [vmem:[%s850_s1] sm:$0xff] }
  0x32   : > { %433 = vmatpush.msrb.mxu0 %v279_v1  ;;  %388 = vmatpush.msra.mxu1 %v216_v4  ;;  %v287_v38 = vld [vmem:[%s693_s20 + $0x2b8] sm:$0xff]  ;;  %v301_v40 = vld [vmem:[%s693_s20 + $0x328] sm:$0xff]  ;;  %v318_v41 = vld [vmem:[%s693_s20 + $0x3b0] sm:$0xff]  ;;  %v339_v46 = vperm.slane %v800_v39, 2  ;;  %v337_v50 = vperm.slane %v800_v39, 0  ;;  %v340_v52 = vperm.slane %v800_v39, 3 }
  0x33   : > { %493 = vmatpush.msrb.mxu3 %v327_v2  ;;  %474 = vmatpush.msrb.mxu2 %v310_v3  ;;  %v269_v42 = vld [vmem:[%s693_s20 + $0x228] sm:$0xff]  ;;  %v286_v43 = vld [vmem:[%s693_s20 + $0x2b0] sm:$0xff]  ;;  %v300_v44 = vld [vmem:[%s693_s20 + $0x320] sm:$0xff]  ;;  %v338_v56 = vperm.slane %v800_v39, 1  ;;  %v343_v2 = vperm.slane %v800_v39, 6 }
  0x34   : > { %434 = vmatpush.msrb.mxu0 %v278_v5  ;;  %453 = vmatpush.msrb.mxu1 %v295_v6  ;;  %v317_v45 = vld [vmem:[%s693_s20 + $0x3a8] sm:$0xff]  ;;  %v268_v47 = vld [vmem:[%s693_s20 + $0x220] sm:$0xff]  ;;  %v299_v49 = vld [vmem:[%s693_s20 + $0x318] sm:$0xff]  ;;  %v341_v6 = vperm.slane %v800_v39, 4 }
  0x35   : > { %475 = vmatpush.msrb.mxu2 %v309_v7  ;;  %494 = vmatpush.msrb.mxu3 %v326_v8  ;;  %v285_v48 = vld [vmem:[%s693_s20 + $0x2a8] sm:$0xff]  ;;  %v316_v51 = vld [vmem:[%s693_s20 + $0x3a0] sm:$0xff]  ;;  %v267_v53 = vld [vmem:[%s693_s20 + $0x218] sm:$0xff]  ;;  %v344_v7 = vperm.slane %v800_v39, 7 }
  0x36   : > { %435 = vmatpush.msrb.mxu0 %v277_v9  ;;  %454 = vmatpush.msrb.mxu1 %v294_v10  ;;  %v284_v54 = vld [vmem:[%s693_s20 + $0x2a0] sm:$0xff]  ;;  %v298_v55 = vld [vmem:[%s693_s20 + $0x310] sm:$0xff]  ;;  %v315_v57 = vld [vmem:[%s693_s20 + $0x398] sm:$0xff]  ;;  %v342_v10 = vperm.slane %v800_v39, 5 }
  0x37   : > { %476 = vmatpush.msrb.mxu2 %v308_v11  ;;  %495 = vmatpush.msrb.mxu3 %v325_v12  ;;  %v266_v58 = vld [vmem:[%s693_s20 + $0x210] sm:$0xff]  ;;  %v283_v59 = vld [vmem:[%s693_s20 + $0x298] sm:$0xff]  ;;  %v297_v60 = vld [vmem:[%s693_s20 + $0x308] sm:$0xff]  ;;  %v645_v11 = vmov 0  }
  0x38   : > { %436 = vmatpush.msrb.mxu0 %v276_v13  ;;  %455 = vmatpush.msrb.mxu1 %v293_v14  ;;  %v314_v61 = vld [vmem:[%s693_s20 + $0x390] sm:$0xff]  ;;  %v265_v62 = vld [vmem:[%s693_s20 + $0x208] sm:$0xff]  ;;  %v296_v0 = vld [vmem:[%s693_s20 + $0x300] sm:$0xff] }
  0x39   : > { %477 = vmatpush.msrb.mxu2 %v307_v15  ;;  %496 = vmatpush.msrb.mxu3 %v324_v16  ;;  %v282_v63 = vld [vmem:[%s693_s20 + $0x290] sm:$0xff]  ;;  %v313_v1 = vld [vmem:[%s693_s20 + $0x388] sm:$0xff]  ;;  %v264_v3 = vld [vmem:[%s693_s20 + $0x200] sm:$0xff] }
  0x3a   : > { %437 = vmatpush.msrb.mxu0 %v275_v17  ;;  %456 = vmatpush.msrb.mxu1 %v292_v18  ;;  %v281_v4 = vld [vmem:[%s693_s20 + $0x288] sm:$0xff]  ;;  %v312_v5 = vld [vmem:[%s693_s20 + $0x380] sm:$0xff] }
  0x3b   : > { %478 = vmatpush.msrb.mxu2 %v306_v19  ;;  %497 = vmatpush.msrb.mxu3 %v323_v20  ;;  %v329_v8 = vld [vmem:[#allocation2] sm:$0x1] }
  0x3c   : > { %438 = vmatpush.msrb.mxu0 %v274_v21  ;;  %457 = vmatpush.msrb.mxu1 %v291_v22  ;;  %v280_v9 = vld [vmem:[%s693_s20 + $0x280] sm:$0xff] }
  0x3d   : > { %479 = vmatpush.msrb.mxu2 %v305_v23  ;;  %498 = vmatpush.msrb.mxu3 %v322_v24 }
  0x3e   : > { %439 = vmatpush.msrb.mxu0 %v273_v25  ;;  %458 = vmatpush.msrb.mxu1 %v290_v26 }
  0x3f   : > { %480 = vmatpush.msrb.mxu2 %v304_v27  ;;  %499 = vmatpush.msrb.mxu3 %v321_v28 }
  0x40   : > { %440 = vmatpush.msrb.mxu0 %v272_v29  ;;  %459 = vmatpush.msrb.mxu1 %v289_v30 }
  0x41   : > { %481 = vmatpush.msrb.mxu2 %v303_v31  ;;  %500 = vmatpush.msrb.mxu3 %v320_v32 }
  0x42   : > { %441 = vmatpush.msrb.mxu0 %v271_v33  ;;  %460 = vmatpush.msrb.mxu1 %v288_v34 }
  0x43   : > { %482 = vmatpush.msrb.mxu2 %v302_v35  ;;  %501 = vmatpush.msrb.mxu3 %v319_v36 }
  0x44   : > { %442 = vmatpush.msrb.mxu0 %v270_v37  ;;  %461 = vmatpush.msrb.mxu1 %v287_v38 }
  0x45   : > { %483 = vmatpush.msrb.mxu2 %v301_v40  ;;  %502 = vmatpush.msrb.mxu3 %v318_v41 }
  0x46   : > { %443 = vmatpush.msrb.mxu0 %v269_v42  ;;  %462 = vmatpush.msrb.mxu1 %v286_v43 }
  0x47   : > { %484 = vmatpush.msrb.mxu2 %v300_v44  ;;  %503 = vmatpush.msrb.mxu3 %v317_v45 }
  0x48   : > { %409 = vmatmul.f32.vlgmr.msra.gmra.mxu2 %v339_v46  ;;  %444 = vmatpush.msrb.mxu0 %v268_v47 }
  0x49   : > { %463 = vmatpush.msrb.mxu1 %v285_v48  ;;  %485 = vmatpush.msrb.mxu2 %v299_v49 }
  0x4a   : > { %504 = vmatpush.msrb.mxu3 %v316_v51  ;;  %369 = vmatmul.f32.vlgmr.msra.gmra.mxu0 %v337_v50 }
  0x4b   : > { %429 = vmatmul.f32.vlgmr.msra.gmra.mxu3 %v340_v52  ;;  %445 = vmatpush.msrb.mxu0 %v267_v53 }
  0x4c   : > { %464 = vmatpush.msrb.mxu1 %v284_v54  ;;  %486 = vmatpush.msrb.mxu2 %v298_v55 }
  0x4d   : > { %505 = vmatpush.msrb.mxu3 %v315_v57  ;;  %389 = vmatmul.f32.vlgmr.msra.gmra.mxu1 %v338_v56 }
  0x4e   : > { %446 = vmatpush.msrb.mxu0 %v266_v58  ;;  %465 = vmatpush.msrb.mxu1 %v283_v59 }
  0x4f   : > { %487 = vmatpush.msrb.mxu2 %v297_v60  ;;  %506 = vmatpush.msrb.mxu3 %v314_v61 }
  0x50   : > { %447 = vmatpush.msrb.mxu0 %v265_v62  ;;  %466 = vmatpush.msrb.mxu1 %v282_v63 }
  0x51   : > { %488 = vmatpush.msrb.mxu2 %v296_v0  ;;  %507 = vmatpush.msrb.mxu3 %v313_v1 }
  0x52   : > { %489 = vmatmul.f32.vlgmr.msrb.gmra.mxu2 %v343_v2  ;;  %448 = vmatpush.msrb.mxu0 %v264_v3 }
  0x53   : > { %467 = vmatpush.msrb.mxu1 %v281_v4  ;;  %508 = vmatpush.msrb.mxu3 %v312_v5 }
  0x54   : > { %620 = vset.pattern.permute.xlu0 %v645_v11  ;;  %449 = vmatmul.f32.vlgmr.msrb.gmra.mxu0 %v341_v6 }
  0x55   : > { %509 = vmatmul.f32.vlgmr.msrb.gmra.mxu3 %v344_v7  ;;  %332 = vperm.xlu0 %620, %v329_v8  }
  0x56   : > { %468 = vmatpush.msrb.mxu1 %v280_v9 }
  0x57   : > { %469 = vmatmul.f32.vlgmr.msrb.gmra.mxu1 %v342_v10 }
  0xc7   : > { %v333_v12 = vpop.permute.xlu0 %332  ;;  %v370_v13 = vpop.f32.mrf.mxu0 }
  0xc8   : > { %v335_v14 = vperm.slane %v333_v12, 0 }
  0xca   : > { %v371_v15 = vadd.f32 %v370_v13, %v335_v14  ;;  %v390_v16 = vpop.f32.mrf.mxu1 }
  0xcb   : > { %v410_v17 = vpop.f32.mrf.mxu2 }
  0xcc   : > { %v391_v18 = vadd.f32 %v390_v16, %v371_v15 }
  0xce   : > { %v411_v19 = vadd.f32 %v410_v17, %v391_v18  ;;  %v430_v20 = vpop.f32.mrf.mxu3 }
  0xd0   : > { %v431_v21 = vadd.f32 %v430_v20, %v411_v19 }
  0xd1   : > { %v450_v22 = vpop.f32.mrf.mxu0 }
  0xd2   : > { %v451_v23 = vadd.f32 %v450_v22, %v431_v21 }
  0xd4   : > { %v470_v24 = vpop.f32.mrf.mxu1 }
  0xd5   : > { %v471_v25 = vadd.f32 %v470_v24, %v451_v23  ;;  %v490_v26 = vpop.f32.mrf.mxu2 }
  0xd7   : > { %v491_v27 = vadd.f32 %v490_v26, %v471_v25 }
  0xd8   : > { %v510_v28 = vpop.f32.mrf.mxu3 }
  0xd9   : > { %v511_v29 = vadd.f32 %v510_v28, %v491_v27 }
  0xdb   : > { %513 = vst [vmem:[%s199_s25] sm:$0x1] %v511_v29 }
  0xdc PF: > { %s15_s16 = sadd.s32 1, %s643_s16   ;;  %s853_s14 = smov %s639_s15 }
  0xdd   : > { %p12_p5 = scmp.ge.s32.totalorder %s15_s16, 4   ;;  %s854_s15 = smov %s856_s2 }
  0xdf   :  { %14 = sbr.rel (!%p12_p5) target bundleno = 3 (0x3), region = 62 }

</bundles_post_ra>
